<compile_context>
chip_gen: v5e
topology: v5e:2x2
jax: 0.10.0
libtpu: 0.0.40
codegen_flags: <defaults>
</compile_context>

<pallas_src>
from functools import partial

import jax
import jax.numpy as jnp
from jax.experimental import pallas as pl
from jax.experimental.pallas import tpu as pltpu

H_PAD = 128   # lane-dense hidden width
O_PAD = 128   # lane-dense output width


def gcn_net_kernel(a_ref, x_ref, pool_ref, w0_ref, b0_ref, wh_ref, bh_ref,
                   wd1_ref, bd1_ref, wd2_ref, bd2_ref, out_ref, *, depth):
    a = a_ref[...]                         # [TILE, TILE] diagonal block of block-diag A (bf16/f32)
    x = x_ref[...]                         # [TILE, F_in]
    cd = a.dtype                           # MXU compute dtype

    # --- GraphConv layer 0, reordered: (A @ x) @ W0  (F_in < hidden) ---
    m = jnp.dot(a, x, preferred_element_type=jnp.float32)                 # [TILE, F_in] f32
    h = jnp.dot(m.astype(cd), w0_ref[...],
                preferred_element_type=jnp.float32) + b0_ref[...]
    h = jnp.maximum(h, 0.0)                                               # relu (f32)

    # --- GraphConv layers 1 .. depth-1 (hidden -> hidden), unrolled (depth is small) ---
    for l in range(depth - 1):
        hw = jnp.dot(h.astype(cd), wh_ref[l], preferred_element_type=jnp.float32)
        h = jnp.dot(a, hw.astype(cd), preferred_element_type=jnp.float32) + bh_ref[l]
        h = jnp.maximum(h, 0.0)

    # --- batched readout: per-graph node sums via 0/1 pool matmul -> [P_ROWS, H_PAD] ---
    s = jnp.dot(pool_ref[...], h.astype(cd), preferred_element_type=jnp.float32)

    # --- batched MLP head: Linear -> ReLU -> Linear (single 8x128 x 128x128 matmuls) ---
    z = jnp.dot(s.astype(cd), wd1_ref[...], preferred_element_type=jnp.float32) + bd1_ref[...]
    z = jnp.maximum(z, 0.0)
    out_ref[...] = (jnp.dot(z.astype(cd), wd2_ref[...], preferred_element_type=jnp.float32)
                    + bd2_ref[...])


def _pad_to(x, shape):
    return jnp.pad(x, [(0, t - s) for s, t in zip(x.shape, shape)])


def net_forward(a_norm, x, params, *, depth, compute_dtype=jnp.bfloat16):
    """a_norm: [B, N, N] (D^-1/2 A D^-1/2 per graph), x: [B, N, F_in]. Returns [B, out_features]."""
    B, N, _ = a_norm.shape
    f_in = x.shape[-1]
    out_features = params["wd2"].shape[1]
    BN = B * N
    cd = compute_dtype

    # 2-way row split (v7x megacore) when the 128-lane tile boundary aligns with graph boundaries.
    gsplit = 2 if (B % 2 == 0 and ((B // 2) * N) % 128 == 0) else 1
    tile = BN // gsplit               # rows (and A columns) per grid step
    bpt = B // gsplit                 # graphs per grid step
    p_rows = ((bpt + 7) // 8) * 8     # sublane-dense readout/output rows (extra rows discarded)

    # Block-diagonal batched adjacency: one aggregation matmul per layer for the whole batch.
    eye_b = jnp.eye(B, dtype=a_norm.dtype)
    a_blk = (eye_b[:, None, :, None] * a_norm[:, :, None, :]).reshape(BN, BN).astype(cd)
    x_flat = x.reshape(BN, f_in).astype(cd)

    # Readout pool (identical for every tile): pool[r, c] = 1 iff node-column c belongs to
    # the r-th graph of the tile.  Rows >= bpt are zero padding (their outputs are discarded).
    r_ids = jnp.arange(p_rows)[:, None]
    c_ids = jnp.arange(tile)[None, :] // N
    pool = ((r_ids == c_ids) & (r_ids < bpt)).astype(cd)          # [p_rows, tile]

    # Zero-pad hidden / output dims to 128 lanes (exact: padded columns stay zero throughout).
    # Weights -> compute dtype (MXU operands); biases stay f32 (elementwise path).
    n_hid = max(depth - 1, 1)         # guard depth == 1 (dummy, unused block)
    w0 = _pad_to(params["w0"], (f_in, H_PAD)).astype(cd)
    b0 = _pad_to(params["b0"], (1, H_PAD))
    wh = _pad_to(params["wh"], (n_hid, H_PAD, H_PAD)).astype(cd)
    bh = _pad_to(params["bh"], (n_hid, 1, H_PAD))
    wd1 = _pad_to(params["wd1"], (H_PAD, H_PAD)).astype(cd)
    bd1 = _pad_to(params["bd1"], (1, H_PAD))
    wd2 = _pad_to(params["wd2"], (H_PAD, O_PAD)).astype(cd)
    bd2 = _pad_to(params["bd2"], (1, O_PAD))

    kernel = partial(gcn_net_kernel, depth=depth)

    out = pl.pallas_call(
        kernel,
        out_shape=jax.ShapeDtypeStruct((gsplit, p_rows, O_PAD), jnp.float32),
        grid=(gsplit,),
        in_specs=[
            # Diagonal block of the block-diagonal A (off-diagonal 128-blocks are all zero).
            pl.BlockSpec((tile, tile), lambda g: (g, g)),
            pl.BlockSpec((tile, f_in), lambda g: (g, 0)),              # node feature row tile
            pl.BlockSpec((p_rows, tile), lambda g: (0, 0)),            # readout pool (shared)
            # Shared parameters: constant block index -> stay VMEM-resident across steps.
            pl.BlockSpec((f_in, H_PAD), lambda g: (0, 0)),             # w0
            pl.BlockSpec((1, H_PAD), lambda g: (0, 0)),                # b0
            pl.BlockSpec((n_hid, H_PAD, H_PAD), lambda g: (0, 0, 0)),  # wh
            pl.BlockSpec((n_hid, 1, H_PAD), lambda g: (0, 0, 0)),      # bh
            pl.BlockSpec((H_PAD, H_PAD), lambda g: (0, 0)),            # wd1
            pl.BlockSpec((1, H_PAD), lambda g: (0, 0)),                # bd1
            pl.BlockSpec((H_PAD, O_PAD), lambda g: (0, 0)),            # wd2
            pl.BlockSpec((1, O_PAD), lambda g: (0, 0)),                # bd2
        ],
        out_specs=pl.BlockSpec((None, p_rows, O_PAD), lambda g: (g, 0, 0)),
        compiler_params=pltpu.CompilerParams(
            dimension_semantics=("parallel",),        # graph tiles are independent (megacore on v7x)
            vmem_limit_bytes=32 * 1024 * 1024,
        ),
    )(a_blk, x_flat, pool, w0, b0, wh, bh, wd1, bd1, wd2, bd2)

    return out[:, :bpt, :].reshape(B, O_PAD)[:, :out_features]


def net_forward_ref(a_norm, x, params, *, depth, compute_dtype=jnp.float32):
    """Pure-JAX reference with the same operand precision as the kernel (for verification)."""
    cd = compute_dtype
    hi = jax.lax.Precision.HIGHEST

    def mm(a, b):
        return jnp.dot(a.astype(cd), b.astype(cd),
                       preferred_element_type=jnp.float32, precision=hi)

    def single(a, xg):
        h = jnp.maximum(mm(mm(a, xg), params["w0"]) + params["b0"], 0.0)
        for l in range(depth - 1):
            h = jnp.maximum(mm(a, mm(h, params["wh"][l])) + params["bh"][l], 0.0)
        s = jnp.sum(h.astype(cd).astype(jnp.float32), axis=0, keepdims=True)
        z = jnp.maximum(mm(s, params["wd1"]) + params["bd1"], 0.0)
        return (mm(z, params["wd2"]) + params["bd2"])[0]

    return jax.vmap(single)(a_norm, x)


def make_params(key, in_features, hidden, out_features, depth):
    ks = jax.random.split(key, 6)
    scale = 0.1
    return {
        "w0":  scale * jax.random.normal(ks[0], (in_features, hidden), jnp.float32),
        "b0":  jnp.zeros((1, hidden), jnp.float32),
        "wh":  scale * jax.random.normal(ks[1], (depth - 1, hidden, hidden), jnp.float32),
        "bh":  jnp.zeros((depth - 1, 1, hidden), jnp.float32),
        "wd1": scale * jax.random.normal(ks[2], (hidden, hidden), jnp.float32),
        "bd1": scale * jax.random.normal(ks[3], (1, hidden), jnp.float32),
        "wd2": scale * jax.random.normal(ks[4], (hidden, out_features), jnp.float32),
        "bd2": scale * jax.random.normal(ks[5], (1, out_features), jnp.float32),
    }


if __name__ == "__main__":
    # A batch of B molecular graphs, each with N nodes.
    # in_features=16, hidden_features=32, out_features=4, depth=3, activation='relu'.
    B, N, IN_F, HID, OUT_F, DEPTH = 8, 32, 16, 32, 4, 3

    key = jax.random.PRNGKey(0)
    k_adj, k_x, k_params = jax.random.split(key, 3)

    # Deterministic random undirected graphs (no self loops), DGL norm='both'.
    adj = jax.random.bernoulli(k_adj, 0.15, (B, N, N)).astype(jnp.float32)
    eye = jnp.eye(N, dtype=jnp.float32)
    adj = jnp.maximum(adj, jnp.swapaxes(adj, -1, -2)) * (1.0 - eye)
    deg = jnp.clip(jnp.sum(adj, axis=-1), 1.0, None)          # clamp(min=1), as in DGL
    norm = 1.0 / jnp.sqrt(deg)
    a_norm = norm[:, :, None] * adj * norm[:, None, :]        # D^-1/2 A D^-1/2 per graph

    x = jax.random.normal(k_x, (B, N, IN_F), jnp.float32)
    params = make_params(k_params, IN_F, HID, OUT_F, DEPTH)

    # f32 path: tight check against pure-JAX reference.
    out_f32 = jax.block_until_ready(
        net_forward(a_norm, x, params, depth=DEPTH, compute_dtype=jnp.float32))
    ref_f32 = net_forward_ref(a_norm, x, params, depth=DEPTH, compute_dtype=jnp.float32)
    assert out_f32.shape == (B, OUT_F), out_f32.shape
    assert jnp.allclose(out_f32, ref_f32, atol=5e-3, rtol=5e-3), (out_f32, ref_f32)

    # bf16 MXU-operand path (default, v6e/v7x peak rate) vs precision-matched reference.
    out_bf16 = jax.block_until_ready(
        net_forward(a_norm, x, params, depth=DEPTH, compute_dtype=jnp.bfloat16))
    ref_bf16 = net_forward_ref(a_norm, x, params, depth=DEPTH, compute_dtype=jnp.bfloat16)
    assert out_bf16.shape == (B, OUT_F), out_bf16.shape
    assert jnp.allclose(out_bf16, ref_bf16, atol=1e-2, rtol=1e-2), (out_bf16, ref_bf16)

    print("KERNEL_OK")
</pallas_src>

<mosaic_0001>
module attributes {stable_mosaic.version = 11 : i64} {
  func.func @gcn_net_kernel(%arg0: i32, %arg1: memref<128x128xf32, #tpu.memory_space<vmem>>, %arg2: memref<128x16xf32, #tpu.memory_space<vmem>>, %arg3: memref<8x128xf32, #tpu.memory_space<vmem>>, %arg4: memref<16x128xf32, #tpu.memory_space<vmem>>, %arg5: memref<1x128xf32, #tpu.memory_space<vmem>>, %arg6: memref<2x128x128xf32, #tpu.memory_space<vmem>>, %arg7: memref<2x1x128xf32, #tpu.memory_space<vmem>>, %arg8: memref<128x128xf32, #tpu.memory_space<vmem>>, %arg9: memref<1x128xf32, #tpu.memory_space<vmem>>, %arg10: memref<128x128xf32, #tpu.memory_space<vmem>>, %arg11: memref<1x128xf32, #tpu.memory_space<vmem>>, %arg12: memref<1x8x128xf32, #tpu.memory_space<vmem>>) attributes {dimension_semantics = [#tpu.dimension_semantics<parallel>], iteration_bounds = array<i64: 2>, scalar_prefetch = 0 : i64, scratch_operands = 0 : i64, tpu.core_type = #tpu.core_type<tc>, window_params = [{transform_indices = @transform_0, window_bounds = array<i64: 128, 128>}, {transform_indices = @transform_1, window_bounds = array<i64: 128, 16>}, {pipeline_mode = #tpu.pipeline_mode<synchronous>, transform_indices = @transform_2, window_bounds = array<i64: 8, 128>}, {pipeline_mode = #tpu.pipeline_mode<synchronous>, transform_indices = @transform_3, window_bounds = array<i64: 16, 128>}, {pipeline_mode = #tpu.pipeline_mode<synchronous>, transform_indices = @transform_4, window_bounds = array<i64: 1, 128>}, {pipeline_mode = #tpu.pipeline_mode<synchronous>, transform_indices = @transform_5, window_bounds = array<i64: 2, 128, 128>}, {pipeline_mode = #tpu.pipeline_mode<synchronous>, transform_indices = @transform_6, window_bounds = array<i64: 2, 1, 128>}, {pipeline_mode = #tpu.pipeline_mode<synchronous>, transform_indices = @transform_7, window_bounds = array<i64: 128, 128>}, {pipeline_mode = #tpu.pipeline_mode<synchronous>, transform_indices = @transform_8, window_bounds = array<i64: 1, 128>}, {pipeline_mode = #tpu.pipeline_mode<synchronous>, transform_indices = @transform_9, window_bounds = array<i64: 128, 128>}, {pipeline_mode = #tpu.pipeline_mode<synchronous>, transform_indices = @transform_10, window_bounds = array<i64: 1, 128>}, {transform_indices = @transform_11, window_bounds = array<i64: 1, 8, 128>}]} {
    %c0 = arith.constant 0 : index
    %c0_0 = arith.constant 0 : index
    %0 = vector.load %arg1[%c0, %c0_0] : memref<128x128xf32, #tpu.memory_space<vmem>>, vector<128x128xf32>
    %c0_1 = arith.constant 0 : index
    %c0_2 = arith.constant 0 : index
    %1 = vector.load %arg2[%c0_1, %c0_2] : memref<128x16xf32, #tpu.memory_space<vmem>>, vector<128x16xf32>
    %cst = arith.constant dense<0.000000e+00> : vector<128x16xf32>
    %2 = tpu.matmul %0, %1, %cst {dimension_numbers = #tpu.dot_dimension_numbers<[1], [0], [0], [1], [0, 0, 1, 1], [], []>} : vector<128x128xf32>, vector<128x16xf32>, vector<128x16xf32> -> vector<128x16xf32>
    %c0_3 = arith.constant 0 : index
    %c0_4 = arith.constant 0 : index
    %3 = vector.load %arg4[%c0_3, %c0_4] : memref<16x128xf32, #tpu.memory_space<vmem>>, vector<16x128xf32>
    %cst_5 = arith.constant dense<0.000000e+00> : vector<128x128xf32>
    %4 = tpu.matmul %2, %3, %cst_5 {dimension_numbers = #tpu.dot_dimension_numbers<[1], [0], [0], [1], [0, 0, 1, 1], [], []>} : vector<128x16xf32>, vector<16x128xf32>, vector<128x128xf32> -> vector<128x128xf32>
    %c0_6 = arith.constant 0 : index
    %c0_7 = arith.constant 0 : index
    %5 = vector.load %arg5[%c0_6, %c0_7] : memref<1x128xf32, #tpu.memory_space<vmem>>, vector<1x128xf32>
    %6 = vector.broadcast %5 : vector<1x128xf32> to vector<128x128xf32>
    %7 = arith.addf %4, %6 : vector<128x128xf32>
    %cst_8 = arith.constant 0.000000e+00 : f32
    %8 = vector.broadcast %cst_8 : f32 to vector<128x128xf32>
    %9 = arith.maximumf %7, %8 : vector<128x128xf32>
    %c0_9 = arith.constant 0 : index
    %c0_10 = arith.constant 0 : index
    %c0_11 = arith.constant 0 : index
    %10 = vector.load %arg6[%c0_9, %c0_10, %c0_11] : memref<2x128x128xf32, #tpu.memory_space<vmem>>, vector<1x128x128xf32>
    %11 = vector.shape_cast %10 : vector<1x128x128xf32> to vector<128x128xf32>
    %cst_12 = arith.constant dense<0.000000e+00> : vector<128x128xf32>
    %12 = tpu.matmul %9, %11, %cst_12 {dimension_numbers = #tpu.dot_dimension_numbers<[1], [0], [0], [1], [0, 0, 1, 1], [], []>} : vector<128x128xf32>, vector<128x128xf32>, vector<128x128xf32> -> vector<128x128xf32>
    %cst_13 = arith.constant dense<0.000000e+00> : vector<128x128xf32>
    %13 = tpu.matmul %0, %12, %cst_13 {dimension_numbers = #tpu.dot_dimension_numbers<[1], [0], [0], [1], [0, 0, 1, 1], [], []>} : vector<128x128xf32>, vector<128x128xf32>, vector<128x128xf32> -> vector<128x128xf32>
    %c0_14 = arith.constant 0 : index
    %c0_15 = arith.constant 0 : index
    %c0_16 = arith.constant 0 : index
    %14 = vector.load %arg7[%c0_14, %c0_15, %c0_16] : memref<2x1x128xf32, #tpu.memory_space<vmem>>, vector<1x1x128xf32>
    %15 = vector.shape_cast %14 : vector<1x1x128xf32> to vector<1x128xf32>
    %16 = vector.broadcast %15 : vector<1x128xf32> to vector<128x128xf32>
    %17 = arith.addf %13, %16 : vector<128x128xf32>
    %cst_17 = arith.constant 0.000000e+00 : f32
    %18 = vector.broadcast %cst_17 : f32 to vector<128x128xf32>
    %19 = arith.maximumf %17, %18 : vector<128x128xf32>
    %c1 = arith.constant 1 : index
    %c0_18 = arith.constant 0 : index
    %c0_19 = arith.constant 0 : index
    %20 = vector.load %arg6[%c1, %c0_18, %c0_19] : memref<2x128x128xf32, #tpu.memory_space<vmem>>, vector<1x128x128xf32>
    %21 = vector.shape_cast %20 : vector<1x128x128xf32> to vector<128x128xf32>
    %cst_20 = arith.constant dense<0.000000e+00> : vector<128x128xf32>
    %22 = tpu.matmul %19, %21, %cst_20 {dimension_numbers = #tpu.dot_dimension_numbers<[1], [0], [0], [1], [0, 0, 1, 1], [], []>} : vector<128x128xf32>, vector<128x128xf32>, vector<128x128xf32> -> vector<128x128xf32>
    %cst_21 = arith.constant dense<0.000000e+00> : vector<128x128xf32>
    %23 = tpu.matmul %0, %22, %cst_21 {dimension_numbers = #tpu.dot_dimension_numbers<[1], [0], [0], [1], [0, 0, 1, 1], [], []>} : vector<128x128xf32>, vector<128x128xf32>, vector<128x128xf32> -> vector<128x128xf32>
    %c1_22 = arith.constant 1 : index
    %c0_23 = arith.constant 0 : index
    %c0_24 = arith.constant 0 : index
    %24 = vector.load %arg7[%c1_22, %c0_23, %c0_24] : memref<2x1x128xf32, #tpu.memory_space<vmem>>, vector<1x1x128xf32>
    %25 = vector.shape_cast %24 : vector<1x1x128xf32> to vector<1x128xf32>
    %26 = vector.broadcast %25 : vector<1x128xf32> to vector<128x128xf32>
    %27 = arith.addf %23, %26 : vector<128x128xf32>
    %cst_25 = arith.constant 0.000000e+00 : f32
    %28 = vector.broadcast %cst_25 : f32 to vector<128x128xf32>
    %29 = arith.maximumf %27, %28 : vector<128x128xf32>
    %c0_26 = arith.constant 0 : index
    %c0_27 = arith.constant 0 : index
    %30 = vector.load %arg3[%c0_26, %c0_27] : memref<8x128xf32, #tpu.memory_space<vmem>>, vector<8x128xf32>
    %cst_28 = arith.constant dense<0.000000e+00> : vector<8x128xf32>
    %31 = tpu.matmul %30, %29, %cst_28 {dimension_numbers = #tpu.dot_dimension_numbers<[1], [0], [0], [1], [0, 0, 1, 1], [], []>} : vector<8x128xf32>, vector<128x128xf32>, vector<8x128xf32> -> vector<8x128xf32>
    %c0_29 = arith.constant 0 : index
    %c0_30 = arith.constant 0 : index
    %32 = vector.load %arg8[%c0_29, %c0_30] : memref<128x128xf32, #tpu.memory_space<vmem>>, vector<128x128xf32>
    %cst_31 = arith.constant dense<0.000000e+00> : vector<8x128xf32>
    %33 = tpu.matmul %31, %32, %cst_31 {dimension_numbers = #tpu.dot_dimension_numbers<[1], [0], [0], [1], [0, 0, 1, 1], [], []>} : vector<8x128xf32>, vector<128x128xf32>, vector<8x128xf32> -> vector<8x128xf32>
    %c0_32 = arith.constant 0 : index
    %c0_33 = arith.constant 0 : index
    %34 = vector.load %arg9[%c0_32, %c0_33] : memref<1x128xf32, #tpu.memory_space<vmem>>, vector<1x128xf32>
    %35 = vector.broadcast %34 : vector<1x128xf32> to vector<8x128xf32>
    %36 = arith.addf %33, %35 : vector<8x128xf32>
    %cst_34 = arith.constant 0.000000e+00 : f32
    %37 = vector.broadcast %cst_34 : f32 to vector<8x128xf32>
    %38 = arith.maximumf %36, %37 : vector<8x128xf32>
    %c0_35 = arith.constant 0 : index
    %c0_36 = arith.constant 0 : index
    %39 = vector.load %arg10[%c0_35, %c0_36] : memref<128x128xf32, #tpu.memory_space<vmem>>, vector<128x128xf32>
    %cst_37 = arith.constant dense<0.000000e+00> : vector<8x128xf32>
    %40 = tpu.matmul %38, %39, %cst_37 {dimension_numbers = #tpu.dot_dimension_numbers<[1], [0], [0], [1], [0, 0, 1, 1], [], []>} : vector<8x128xf32>, vector<128x128xf32>, vector<8x128xf32> -> vector<8x128xf32>
    %c0_38 = arith.constant 0 : index
    %c0_39 = arith.constant 0 : index
    %41 = vector.load %arg11[%c0_38, %c0_39] : memref<1x128xf32, #tpu.memory_space<vmem>>, vector<1x128xf32>
    %42 = vector.broadcast %41 : vector<1x128xf32> to vector<8x128xf32>
    %43 = arith.addf %40, %42 : vector<8x128xf32>
    %c0_40 = arith.constant 0 : index
    %c0_41 = arith.constant 0 : index
    %c0_42 = arith.constant 0 : index
    %44 = vector.load %arg12[%c0_40, %c0_41, %c0_42] : memref<1x8x128xf32, #tpu.memory_space<vmem>>, vector<1x8x128xf32>
    %45 = vector.shape_cast %44 : vector<1x8x128xf32> to vector<8x128xf32>
    %46 = vector.shape_cast %43 : vector<8x128xf32> to vector<1x8x128xf32>
    tpu.vector_store %arg12[%c0_40, %c0_41, %c0_42], %46 {strides = array<i32>} : memref<1x8x128xf32, #tpu.memory_space<vmem>>, vector<1x8x128xf32>,
    return
  }
  func.func @transform_0(%arg0: i32) -> (i32, i32) {
    %c0_i32 = arith.constant 0 : i32
    return %arg0, %arg0 : i32, i32
  }
  func.func @transform_1(%arg0: i32) -> (i32, i32) {
    %c0_i32 = arith.constant 0 : i32
    %c0_i32_0 = arith.constant 0 : i32
    return %arg0, %c0_i32 : i32, i32
  }
  func.func @transform_2(%arg0: i32) -> (i32, i32) {
    %c0_i32 = arith.constant 0 : i32
    %c0_i32_0 = arith.constant 0 : i32
    %c0_i32_1 = arith.constant 0 : i32
    return %c0_i32, %c0_i32_0 : i32, i32
  }
  func.func @transform_3(%arg0: i32) -> (i32, i32) {
    %c0_i32 = arith.constant 0 : i32
    %c0_i32_0 = arith.constant 0 : i32
    %c0_i32_1 = arith.constant 0 : i32
    return %c0_i32, %c0_i32_0 : i32, i32
  }
  func.func @transform_4(%arg0: i32) -> (i32, i32) {
    %c0_i32 = arith.constant 0 : i32
    %c0_i32_0 = arith.constant 0 : i32
    %c0_i32_1 = arith.constant 0 : i32
    return %c0_i32, %c0_i32_0 : i32, i32
  }
  func.func @transform_5(%arg0: i32) -> (i32, i32, i32) {
    %c0_i32 = arith.constant 0 : i32
    %c0_i32_0 = arith.constant 0 : i32
    %c0_i32_1 = arith.constant 0 : i32
    %c0_i32_2 = arith.constant 0 : i32
    return %c0_i32, %c0_i32_0, %c0_i32_1 : i32, i32, i32
  }
  func.func @transform_6(%arg0: i32) -> (i32, i32, i32) {
    %c0_i32 = arith.constant 0 : i32
    %c0_i32_0 = arith.constant 0 : i32
    %c0_i32_1 = arith.constant 0 : i32
    %c0_i32_2 = arith.constant 0 : i32
    return %c0_i32, %c0_i32_0, %c0_i32_1 : i32, i32, i32
  }
  func.func @transform_7(%arg0: i32) -> (i32, i32) {
    %c0_i32 = arith.constant 0 : i32
    %c0_i32_0 = arith.constant 0 : i32
    %c0_i32_1 = arith.constant 0 : i32
    return %c0_i32, %c0_i32_0 : i32, i32
  }
  func.func @transform_8(%arg0: i32) -> (i32, i32) {
    %c0_i32 = arith.constant 0 : i32
    %c0_i32_0 = arith.constant 0 : i32
    %c0_i32_1 = arith.constant 0 : i32
    return %c0_i32, %c0_i32_0 : i32, i32
  }
  func.func @transform_9(%arg0: i32) -> (i32, i32) {
    %c0_i32 = arith.constant 0 : i32
    %c0_i32_0 = arith.constant 0 : i32
    %c0_i32_1 = arith.constant 0 : i32
    return %c0_i32, %c0_i32_0 : i32, i32
  }
  func.func @transform_10(%arg0: i32) -> (i32, i32) {
    %c0_i32 = arith.constant 0 : i32
    %c0_i32_0 = arith.constant 0 : i32
    %c0_i32_1 = arith.constant 0 : i32
    return %c0_i32, %c0_i32_0 : i32, i32
  }
  func.func @transform_11(%arg0: i32) -> (i32, i32, i32) {
    %c0_i32 = arith.constant 0 : i32
    %c0_i32_0 = arith.constant 0 : i32
    %c0_i32_1 = arith.constant 0 : i32
    return %arg0, %c0_i32, %c0_i32_0 : i32, i32, i32
  }
}

</mosaic_0001>

<bundles_post_ra>
// kernel: tpu_custom_call.1
= control target key start
LH: loop header
LB: loop body
LE: loop exit
PB: predicated region body
PF: predicated region fallthrough
CT: control target
= control target key end

     0   :  { %s2147_s0 = inlined_call_operand.hbm [shape: f32[256,256], index: 0, kind: input, shape index: {}]   ;;  %s2148_s1 = inlined_call_operand.vmem [shape: f32[256,16], index: 1, kind: input, shape index: {}]   ;;  %s2149_s2 = inlined_call_operand.vmem [shape: f32[8,128], index: 2, kind: input, shape index: {}]   ;;  %s2150_s3 = inlined_call_operand.vmem [shape: f32[16,128], index: 3, kind: input, shape index: {}]   ;;  %s2151_s4 = inlined_call_operand.vmem [shape: f32[1,128], index: 4, kind: input, shape index: {}]   ;;  %s2152_s5 = inlined_call_operand.vmem [shape: f32[2,128,128], index: 5, kind: input, shape index: {}]   ;;  %s2153_s6 = inlined_call_operand.vmem [shape: f32[2,1,128], index: 6, kind: input, shape index: {}]   ;;  %s2154_s7 = inlined_call_operand.hbm [shape: f32[128,128], index: 7, kind: input, shape index: {}]   ;;  %s2155_s8 = inlined_call_operand.vmem [shape: f32[1,128], index: 8, kind: input, shape index: {}]   ;;  %s2156_s9 = inlined_call_operand.hbm [shape: f32[128,128], index: 9, kind: input, shape index: {}]   ;;  %s2157_s10 = inlined_call_operand.vmem [shape: f32[1,128], index: 10, kind: input, shape index: {}]   ;;  %s2158_s11 = inlined_call_operand.hbm [shape: f32[2,8,128], index: 11, kind: output, shape index: {}]  }
   0x1   :  { %2168 = sst [smem:[#allocation17_spill]] %s2154_s7 }
   0x2   :  { %2169 = sst [smem:[#allocation18_spill]] %s2155_s8 }
   0x3   :  { %2170 = sst [smem:[#allocation19_spill]] %s2156_s9 }
   0x4   :  { %2171 = sst [smem:[#allocation20_spill]] %s2157_s10 }
   0x5   :  { %2172 = sst [smem:[#allocation21_spill]] %s2158_s11 }
   0x6   :  { %16 = vsyncpa [#allocation3], 0 }
   0x7   :  { %18 = vsyncpa [#allocation3 + $0x1], 0 }
   0x8   :  { %19 = vsyncpa [#allocation6], 0 }
   0x9   :  { %20 = vsyncpa [#allocation4], 0 }
   0xa   :  { %22 = vsyncpa [#allocation4 + $0x1], 0  ;;  %s1678_s17 = smov 0   ;;  %s1680_s18 = smov 0  }
   0xb   :  { %s1682_s19 = smov 0   ;;  %s1684_s20 = smov 0  }
   0xc   :  { %s1686_s21 = smov 0   ;;  %s1688_s22 = smov 0  }
   0xd   :  { %s1690_s23 = smov 0  }
   0xe LB: > { %2173 = sst [smem:[#allocation12_spill]] %s1587_s17  ;;  %s1712_s24 = sadd.s32 4294967295, %s1611_s23   ;;  %s1611_s23 = sphi %s1690_s23, %s2196_s23   ;;  %s1607_s22 = sphi %s1688_s22, %s2203_s22   ;;  %s1603_s21 = sphi %s1686_s21, %s2202_s21   ;;  %s1599_s20 = sphi %s1684_s20, %s2201_s20   ;;  %s1595_s19 = sphi %s1682_s19, %s2200_s19   ;;  %s1591_s18 = sphi %s1680_s18, %s2199_s18   ;;  %s1587_s17 = sphi %s1678_s17, %s2198_s17  }
   0xf   : > { %s1256_s25 = sadd.s32 4294967294, %s1611_s23   ;;  %p50_p0 = scmp.ne.s32.totalorder %s1603_s21, %s1599_s20 }
  0x10   : > { %p51_p1 = scmp.eq.s32.totalorder %s1712_s24, 0  ;;  %p288_p2 = scmp.ne.s32.totalorder %s1595_s19, %s1591_s18 }
  0x11   : > { %p289_p4 = scmp.eq.s32.totalorder %s1712_s24, 1  ;;  %p294_p5 = scmp.ne.s32.totalorder %s1591_s18, %s1587_s17 }
  0x12   : > { %p1722_p3 = por %p51_p1, %p50_p0  ;;  %p295_p6 = scmp.eq.s32.totalorder %s1256_s25, 1 }
  0x13   : > { %p1729_p7 = por %p289_p4, %p288_p2  ;;  %p1257_p8 = scmp.ge.s32.totalorder %s1611_s23, 1 }
  0x14   : > { %p1734_p9 = por %p295_p6, %p294_p5  ;;  %p302_p10 = scmp.lt.s32.totalorder %s1611_s23, 3 }
  0x15   : > { %s2175_s28 = scalar_select %p1729_p7, 1, 0 }
  0x16   : > { %s2177_s29 = scalar_select %p1734_p9, 1, 0 }
  0x17   : > { %2176 = sst [smem:[#allocation13_spill]] %s2175_s28  ;;  %p1742_p11 = pnand %p1257_p8, %p302_p10 }
  0x18   : > { %2178 = sst [smem:[#allocation14_spill]] %s2177_s29  ;;  %s1613_s15 = smov [#allocation5]  }
  0x19   : > { %s2179_s7 = sld [smem:[#allocation17_spill]]  ;;  %p1340_p12 = pneg %p1742_p11 }
  0x1a   : > { %s330_s16 = sshll.u32 %s1613_s15, 4  ;;  %s2181_s9 = sld [smem:[#allocation19_spill]]  ;;  %s331_s16 = int_to_ptr.vmem [resolvable:$true] %s330_s16 }
  0x1b   : > { %p1341_p13 = pnand %p1340_p12, %p51_p1  ;;  %s2160_s12 = smov 128  }
  0x1c   : > { %s2161_s26 = smov 8   ;;  %s1616_s15 = smov [#allocation7]  }
  0x1d   : > { %s1761_s20 = sadd.s32 1, %s1611_s23   ;;  %s37_s25 = sadd.s32 1, %s1607_s22 }
  0x1e   : > { %2182 = sst [smem:[#allocation15_spill]] %s1761_s20  ;;  %p44_p2 = scmp.ne.s32.totalorder %s1607_s22, %s1603_s21 }
  0x1f   : > { %s328_s13 = sshll.u32 %s2179_s7, 4  ;;  %s347_s7 = sshll.u32 %s1616_s15, 4  ;;  %s329_s13 = int_to_ptr.hbm [resolvable:$true] %s328_s13  ;;  %s348_s7 = int_to_ptr.vmem [resolvable:$true] %s347_s7 }
  0x20   : > { %s345_s30 = sshll.u32 %s2181_s9, 4  ;;  %s32_s9 = ssub.s32 %s1611_s23, %s1761_s20  ;;  %s346_s30 = int_to_ptr.hbm [resolvable:$true] %s345_s30 }
  0x21   : > { %1343 = dma.hbm_to_vmem [thread:$0]  (!%p1341_p13), %s329_s13, 2048, %s331_s16, [#allocation6], %s2160_s12, %s2160_s12, %s2161_s26  }
  0x22   : > { %1346 = dma.hbm_to_vmem [thread:$0]  (!%p1341_p13), %s346_s30, 2048, %s348_s7, [#allocation6], %s2160_s12, %s2160_s12, %s2161_s26  }
  0x23   : > { %s34_s29 = sor.u32 %s32_s9, %s32_s9  ;;  %p45_p4 = scmp.eq.s32.totalorder %s1611_s23, 0 }
  0x24   : > { %p35_p5 = scmp.eq.s32.totalorder %s34_s29, 0  ;;  %p276_p6 = scmp.eq.s32.totalorder %s32_s9, 0 }
  0x25   : > { %p1769_p8 = por %p45_p4, %p44_p2  ;;  %p1357_p10 = scmp.lt.s32.totalorder %s1611_s23, 2 }
  0x26   : > { %s1775_s16 = scalar_select %p35_p5, %s1607_s22, %s37_s25  }
  0x27   : > { %s2185_s7 = sadd.s32 1, %s1595_s19  ;;  %s364_s15 = sand.u32 1, %s1607_s22  }
  0x28   : > { %2184 = sst [smem:[#allocation16_spill]] %s1775_s16  ;;  %s1309_s12 = sshll.u32 %s1611_s23, 5 }
  0x29   : > { %s1780_s30 = scalar_select %p276_p6, %s1595_s19, %s2185_s7  }
  0x2a   : > { %s1261_s26 = sshll.u32 %s364_s15, 7  ;;  %s373_s20 = sadd.s32 %s1611_s23, %s1309_s12 }
  0x2b   : > { %s1264_s17 = sshll.u32 %s373_s20, 3  ;;  %s368_s10 = scalar_lea.vmem [#allocation2], %s1261_s26 }
  0x2c   : > { %s378_s29 = sshll.u32 %s368_s10, 4  ;;  %s375_s11 = scalar_lea.hbm %s2147_s0, %s1264_s17  ;;  %s379_s29 = int_to_ptr.vmem [resolvable:$true] %s378_s29 }
  0x2d   : > { %s376_s8 = sshll.u32 %s375_s11, 4  ;;  %p1792_p12 = pnand %p1357_p10, %p1769_p8  ;;  %s377_s8 = int_to_ptr.hbm [resolvable:$true] %s376_s8 }
  0x2e   : > { %s365_s7 = scalar_lea.sflag [#allocation3], %s364_s15  ;;  %s1487_s16 = sshra.s32 %s377_s8, 4  ;;  %s1488_s16 = int_to_ptr.hbm [resolvable:$true] %s1487_s16 }
  0x2f   : > { %s1489_s12 = scalar_lea.hbm %s1488_s16, 128  ;;  %p1491_p2 = pneg %p1792_p12 }
  0x30   : > { %p1490_p13 = scmp.ne.s32.totalorder %s1488_s16, %s1489_s12  ;;  %s1494_s11 = scalar_lea.hbm %s2147_s0, 512 }
  0x31   : > { %p1495_p6 = scmp.lt.s32.totalorder %s1488_s16, %s2147_s0  ;;  %p1496_p8 = scmp.lt.s32.totalorder %s1494_s11, %s1489_s12 }
  0x32   : > { %p1492_p4 = pnand %p1491_p2, %p1490_p13 }
  0x33   : > { %p1497_p10 = por %p1496_p8, %p1495_p6 }
  0x34   : > { %p1493_p5 = pneg %p1492_p4 }
  0x36   : > { %p1498_p0 = pnand %p1497_p10, %p1493_p5 }
  0x38   : > { %1501 = shalt.err (!%p1498_p0)
}
  0x39   : > { %s1617_s20 = smov 256   ;;  %s2187_s13 = smov 8  }
  0x3a   : > { %s2188_s15 = smov 128   ;;  %399 = sbr.rel (%p1742_p11) target bundleno = 1742 (0x6ce), region = 64 }
  0x3b   : > { %1350 = dma.hbm_to_vmem [thread:$0]  (!%p1792_p12), %s377_s8, 2048, %s379_s29, %s365_s7, %s1617_s20, %s2188_s15, %s2187_s13  }
  0x3c   : > { %s401_s9 = sand.u32 (!%p1742_p11), 1, %s1603_s21  }
  0x3d   : > { %s1266_s10 = sshll.u32 (!%p1742_p11), %s401_s9, 7  ;;  %s402_s17 = scalar_lea.sflag (!%p1742_p11), [#allocation3], %s401_s9 }
  0x3e   : > { %s1811_s26 = scalar_lea.vmem (!%p1742_p11), [#allocation2], %s1266_s10 }
  0x3f   : > { %1574 = dma.done.wait (%p1722_p3), %s402_s17, 2048  }
  0x40   : > { %1576 = vsyncadd (%p1722_p3), %s402_s17, 4294965248 }
  0x41   : > { %1578 = dma.done.wait (%p51_p1), [#allocation6], 4096  }
  0x42   : > { %1580 = vsyncadd (%p51_p1), [#allocation6], 4294963200  ;;  %s1270_s8 = sshll.u32 %s1712_s24, 4  ;;  %v1844_v16 = vld [vmem:[%s1811_s26] sm:$0xff]  ;;  %v1848_v17 = vld [vmem:[%s1811_s26 + $0x8] sm:$0xff]  ;;  %vm570_vm0 = vcmask 130048  }
  0x43   : > { %p462_p11 = scmp.lt.s32.totalorder %s1270_s8, 31  ;;  %v1852_v18 = vld [vmem:[%s1811_s26 + $0x10] sm:$0xff]  ;;  %v1856_v19 = vld [vmem:[%s1811_s26 + $0x18] sm:$0xff]  ;;  %v1860_v20 = vld [vmem:[%s1811_s26 + $0x48] sm:$0xff]  ;;  %s2189_s17 = sld [smem:[#allocation18_spill]] }
  0x44   : > { %v1864_v21 = vld [vmem:[%s1811_s26 + $0x20] sm:$0xff]  ;;  %v1868_v22 = vld [vmem:[%s1811_s26 + $0x50] sm:$0xff]  ;;  %v1872_v23 = vld [vmem:[%s1811_s26 + $0x28] sm:$0xff]  ;;  %s2192_s28 = sld [smem:[#allocation20_spill]] }
  0x45   : > { %s2205_s8 = smov (!%p462_p11, %s1270_s8), 31  ;;  %v1875_v24 = vld [vmem:[%s1811_s26 + $0x58] sm:$0xff]  ;;  %v565_v25 = vld [vmem:[%s2150_s3 + $0x8] sm:$0xff]  ;;  %v1883_v26 = vld [vmem:[%s1811_s26 + $0x30] sm:$0xff] }
  0x46   : > { %s1271_s14 = sshll.u32 %s2205_s8, 3  ;;  %633 = vmatpush.msra.mxu1 %v565_v25  ;;  %1326 = vmatpush.msra.mxu2 %v565_v25  ;;  %v1886_v27 = vld [vmem:[%s1811_s26 + $0x60] sm:$0xff]  ;;  %v1891_v28 = vld [vmem:[%s1811_s26 + $0x38] sm:$0xff]  ;;  %v1894_v29 = vld [vmem:[%s1811_s26 + $0x68] sm:$0xff] }
  0x47   : > { %s1825_s25 = scalar_lea.vmem %s2148_s1, %s1271_s14  ;;  %v1899_v30 = vld [vmem:[%s1811_s26 + $0x40] sm:$0xff]  ;;  %v1902_v31 = vld [vmem:[%s1811_s26 + $0x70] sm:$0xff]  ;;  %v1907_v32 = vld [vmem:[%s1811_s26 + $0x78] sm:$0xff]  ;;  %s457_s26 = sand.u32 1, %s1591_s18  }
  0x48   : > { %v498_v0 = vld [vmem:[%s1825_s25 + $0x78] sm:$0xff]  ;;  %v497_v1 = vld [vmem:[%s1825_s25 + $0x70] sm:$0xff]  ;;  %v496_v2 = vld [vmem:[%s1825_s25 + $0x68] sm:$0xff]  ;;  %s1269_s8 = sshll.u32 %s457_s26, 3  ;;  %s1306_s14 = sshll.u32 %s1712_s24, 3 }
  0x49   : > { %499 = vmatpush.msra.mxu0 %v498_v0  ;;  %1310 = vmatpush.msra.mxu3 %v498_v0  ;;  %v495_v3 = vld [vmem:[%s1825_s25 + $0x60] sm:$0xff]  ;;  %v494_v4 = vld [vmem:[%s1825_s25 + $0x58] sm:$0xff]  ;;  %v493_v5 = vld [vmem:[%s1825_s25 + $0x50] sm:$0xff]  ;;  %s459_s20 = scalar_lea.vmem [#allocation8], %s1269_s8  ;;  %s1138_s9 = scalar_lea.sflag [#allocation4], %s457_s26 }
  0x4a   : > { %v492_v6 = vld [vmem:[%s1825_s25 + $0x48] sm:$0xff]  ;;  %v491_v7 = vld [vmem:[%s1825_s25 + $0x40] sm:$0xff]  ;;  %v490_v8 = vld [vmem:[%s1825_s25 + $0x38] sm:$0xff]  ;;  %s1150_s13 = sshll.u32 %s459_s20, 4  ;;  %s1151_s13 = int_to_ptr.vmem [resolvable:$true] %s1150_s13 }
  0x4b   : > { %500 = vmatpush.msra.mxu0 %v497_v1  ;;  %1311 = vmatpush.msra.mxu3 %v497_v1  ;;  %v489_v9 = vld [vmem:[%s1825_s25 + $0x30] sm:$0xff]  ;;  %v488_v10 = vld [vmem:[%s1825_s25 + $0x28] sm:$0xff]  ;;  %v487_v11 = vld [vmem:[%s1825_s25 + $0x20] sm:$0xff] }
  0x4c   : > { %v486_v12 = vld [vmem:[%s1825_s25 + $0x18] sm:$0xff]  ;;  %v485_v13 = vld [vmem:[%s1825_s25 + $0x10] sm:$0xff]  ;;  %v484_v14 = vld [vmem:[%s1825_s25 + $0x8] sm:$0xff] }
  0x4d   : > { %501 = vmatpush.msra.mxu0 %v496_v2  ;;  %1312 = vmatpush.msra.mxu3 %v496_v2  ;;  %v483_v15 = vld [vmem:[%s1825_s25] sm:$0xff]  ;;  %v715_v46 = vld [vmem:[%s2152_s5 + $0x78] sm:$0xff]  ;;  %v714_v47 = vld [vmem:[%s2152_s5 + $0x70] sm:$0xff]  ;;  %s2190_s25 = sld [smem:[#allocation21_spill]] }
  0x4e   : > { %v564_v33 = vld [vmem:[%s2150_s3] sm:$0xff]  ;;  %v713_v48 = vld [vmem:[%s2152_s5 + $0x68] sm:$0xff]  ;;  %v711_v51 = vld [vmem:[%s2152_s5 + $0x58] sm:$0xff] }
  0x4f   : > { %502 = vmatpush.msra.mxu0 %v495_v3  ;;  %1313 = vmatpush.msra.mxu3 %v495_v3  ;;  %v712_v49 = vld [vmem:[%s2152_s5 + $0x60] sm:$0xff]  ;;  %v710_v53 = vld [vmem:[%s2152_s5 + $0x50] sm:$0xff]  ;;  %v709_v54 = vld [vmem:[%s2152_s5 + $0x48] sm:$0xff] }
  0x50   : > { %634 = vmatpush.msra.mxu1 %v564_v33  ;;  %1327 = vmatpush.msra.mxu2 %v564_v33  ;;  %v708_v55 = vld [vmem:[%s2152_s5 + $0x40] sm:$0xff]  ;;  %v707_v56 = vld [vmem:[%s2152_s5 + $0x38] sm:$0xff]  ;;  %v706_v58 = vld [vmem:[%s2152_s5 + $0x30] sm:$0xff] }
  0x51   : > { %503 = vmatpush.msra.mxu0 %v494_v4  ;;  %1314 = vmatpush.msra.mxu3 %v494_v4  ;;  %v705_v59 = vld [vmem:[%s2152_s5 + $0x28] sm:$0xff]  ;;  %v704_v60 = vld [vmem:[%s2152_s5 + $0x20] sm:$0xff]  ;;  %v703_v61 = vld [vmem:[%s2152_s5 + $0x18] sm:$0xff] }
  0x52   : > { %716 = vmatpush.msrb.mxu2 %v715_v46  ;;  %v702_v63 = vld [vmem:[%s2152_s5 + $0x10] sm:$0xff]  ;;  %v701_v0 = vld [vmem:[%s2152_s5 + $0x8] sm:$0xff]  ;;  %v700_v1 = vld [vmem:[%s2152_s5] sm:$0xff] }
  0x53   : > { %504 = vmatpush.msra.mxu0 %v493_v5  ;;  %1315 = vmatpush.msra.mxu3 %v493_v5  ;;  %v1422_v2 = vld [vmem:[%s2151_s4] ss:$0 sm:$0xff]  ;;  %s1148_s7 = scalar_lea.hbm %s2190_s25, %s1306_s14  ;;  %s1537_s16 = scalar_lea.hbm %s2190_s25, 16 }
  0x54   : > { %717 = vmatpush.msrb.mxu2 %v714_v47  ;;  %s1152_s15 = sshll.u32 %s1148_s7, 4  ;;  %s1153_s15 = int_to_ptr.hbm [resolvable:$true] %s1152_s15 }
  0x55   : > { %505 = vmatpush.msra.mxu0 %v492_v6  ;;  %1316 = vmatpush.msra.mxu3 %v492_v6  ;;  %s1531_s10 = sshra.s32 %s1153_s15, 4  ;;  %s1532_s10 = int_to_ptr.hbm [resolvable:$true] %s1531_s10 }
  0x56   : > { %718 = vmatpush.msrb.mxu2 %v713_v48  ;;  %s1533_s24 = scalar_lea.hbm %s1532_s10, 8  ;;  %p1538_p12 = scmp.lt.s32.totalorder %s1532_s10, %s2190_s25 }
  0x57   : > { %506 = vmatpush.msra.mxu0 %v491_v7  ;;  %1317 = vmatpush.msra.mxu3 %v491_v7  ;;  %p1534_p1 = scmp.ne.s32.totalorder %s1532_s10, %s1533_s24  ;;  %p1539_p13 = scmp.lt.s32.totalorder %s1537_s16, %s1533_s24 }
  0x58   : > { %719 = vmatpush.msrb.mxu2 %v712_v49 }
  0x59   : > { %507 = vmatpush.msra.mxu0 %v490_v8  ;;  %1318 = vmatpush.msra.mxu3 %v490_v8  ;;  %p1535_p3 = pnand %p1534_p1, %p1729_p7  ;;  %p1540_p2 = por %p1539_p13, %p1538_p12 }
  0x5a   : > { %720 = vmatpush.msrb.mxu2 %v711_v51 }
  0x5b   : > { %508 = vmatpush.msra.mxu0 %v489_v9  ;;  %1319 = vmatpush.msra.mxu3 %v489_v9  ;;  %p1536_p0 = pneg %p1535_p3 }
  0x5c   : > { %721 = vmatpush.msrb.mxu2 %v710_v53 }
  0x5d   : > { %509 = vmatpush.msra.mxu0 %v488_v10  ;;  %1320 = vmatpush.msra.mxu3 %v488_v10  ;;  %p1541_p4 = pnand %p1540_p2, %p1536_p0 }
  0x5e   : > { %722 = vmatpush.msrb.mxu2 %v709_v54 }
  0x5f   : > { %510 = vmatpush.msra.mxu0 %v487_v11  ;;  %1321 = vmatpush.msra.mxu3 %v487_v11 }
  0x60   : > { %723 = vmatpush.msrb.mxu2 %v708_v55 }
  0x61   : > { %511 = vmatpush.msra.mxu0 %v486_v12  ;;  %1322 = vmatpush.msra.mxu3 %v486_v12 }
  0x62   : > { %724 = vmatpush.msrb.mxu2 %v707_v56 }
  0x63   : > { %512 = vmatpush.msra.mxu0 %v485_v13  ;;  %1323 = vmatpush.msra.mxu3 %v485_v13 }
  0x64   : > { %725 = vmatpush.msrb.mxu2 %v706_v58 }
  0x65   : > { %513 = vmatpush.msra.mxu0 %v484_v14  ;;  %1324 = vmatpush.msra.mxu3 %v484_v14 }
  0x66   : > { %726 = vmatpush.msrb.mxu2 %v705_v59 }
  0x67   : > { %514 = vmatpush.msra.mxu0 %v483_v15  ;;  %1325 = vmatpush.msra.mxu3 %v483_v15 }
  0x68   : > { %515 = vmatmul.f32.vlgmr.msra.gmra.mxu0 %v1844_v16  ;;  %542 = vmatmul.f32.vlgmr.msra.gmra.mxu3 %v1860_v20 }
  0x69   : > { %727 = vmatpush.msrb.mxu2 %v704_v60 }
  0x6b   : > { %728 = vmatpush.msrb.mxu2 %v703_v61 }
  0x6d   : > { %729 = vmatpush.msrb.mxu2 %v702_v63 }
  0x6f   : > { %730 = vmatpush.msrb.mxu2 %v701_v0 }
  0x70   : > { %518 = vmatmul.f32.gmra.mxu0 %v1848_v17  ;;  %545 = vmatmul.f32.gmra.mxu3 %v1868_v22 }
  0x71   : > { %731 = vmatpush.msrb.mxu2 %v700_v1 }
  0x78   : > { %521 = vmatmul.f32.gmra.mxu0 %v1852_v18  ;;  %548 = vmatmul.f32.gmra.mxu3 %v1875_v24 }
  0x80   : > { %524 = vmatmul.f32.gmra.mxu0 %v1856_v19  ;;  %551 = vmatmul.f32.gmra.mxu3 %v1886_v27 }
  0x88   : > { %527 = vmatmul.f32.gmra.mxu0 %v1864_v21  ;;  %554 = vmatmul.f32.gmra.mxu3 %v1894_v29 }
  0x90   : > { %530 = vmatmul.f32.gmra.mxu0 %v1872_v23  ;;  %557 = vmatmul.f32.gmra.mxu3 %v1902_v31 }
  0x98   : > { %533 = vmatmul.f32.gmra.mxu0 %v1883_v26  ;;  %560 = vmatmul.f32.gmra.mxu3 %v1907_v32 }
  0xa0   : > { %536 = vmatmul.f32.gmra.mxu0 %v1891_v28 }
  0xa8   : > { %539 = vmatmul.f32.gmra.mxu0 %v1899_v30 }
  0xe5   : > { %v516_v34 = vpop.f32.mrf.mxu0 }
  0xe6   : > { %1272 = vmatmul.msk.f32.vlgmr.msra.gmra.mxu1 %vm570_vm0, %v516_v34 }
  0xeb   : > { %v543_v39 = vpop.f32.mrf.mxu3 }
  0xed   : > { %v519_v35 = vpop.f32.mrf.mxu0 }
  0xee   : > { %1273 = vmatmul.msk.f32.gmra.mxu1 %vm570_vm0, %v519_v35 }
  0xf3   : > { %v546_v41 = vpop.f32.mrf.mxu3 }
  0xf5   : > { %v522_v36 = vpop.f32.mrf.mxu0 }
  0xf6   : > { %1274 = vmatmul.msk.f32.gmra.mxu1 %vm570_vm0, %v522_v36 }
  0xfb   : > { %v549_v43 = vpop.f32.mrf.mxu3 }
  0xfd   : > { %v525_v37 = vpop.f32.mrf.mxu0 }
  0xfe   : > { %1275 = vmatmul.msk.f32.gmra.mxu1 %vm570_vm0, %v525_v37 }
 0x103   : > { %v552_v45 = vpop.f32.mrf.mxu3 }
 0x104   : > { %1284 = vmatmul.msk.f32.vlgmr.msra.gmra.mxu2 %vm570_vm0, %v552_v45 }
 0x105   : > { %v528_v38 = vpop.f32.mrf.mxu0 }
 0x106   : > { %1276 = vmatmul.msk.f32.gmra.mxu1 %vm570_vm0, %v528_v38 }
 0x10b   : > { %v555_v52 = vpop.f32.mrf.mxu3 }
 0x10c   : > { %1285 = vmatmul.msk.f32.gmra.mxu2 %vm570_vm0, %v555_v52 }
 0x10d   : > { %v531_v40 = vpop.f32.mrf.mxu0 }
 0x10e   : > { %1277 = vmatmul.msk.f32.gmra.mxu1 %vm570_vm0, %v531_v40 }
 0x113   : > { %v558_v57 = vpop.f32.mrf.mxu3 }
 0x114   : > { %1286 = vmatmul.msk.f32.gmra.mxu2 %vm570_vm0, %v558_v57 }
 0x115   : > { %v534_v42 = vpop.f32.mrf.mxu0 }
 0x116   : > { %1278 = vmatmul.msk.f32.gmra.mxu1 %vm570_vm0, %v534_v42 }
 0x11b   : > { %v561_v62 = vpop.f32.mrf.mxu3 }
 0x11c   : > { %1287 = vmatmul.msk.f32.gmra.mxu2 %vm570_vm0, %v561_v62 }
 0x11d   : > { %v537_v44 = vpop.f32.mrf.mxu0 }
 0x11e   : > { %1279 = vmatmul.msk.f32.gmra.mxu1 %vm570_vm0, %v537_v44 }
 0x125   : > { %v540_v50 = vpop.f32.mrf.mxu0 }
 0x126   : > { %1280 = vmatmul.msk.f32.gmra.mxu1 %vm570_vm0, %v540_v50 }
 0x12e   : > { %1281 = vmatmul.msk.f32.gmra.mxu1 %vm570_vm0, %v543_v39 }
 0x136   : > { %1282 = vmatmul.msk.f32.gmra.mxu1 %vm570_vm0, %v546_v41 }
 0x13e   : > { %1283 = vmatmul.msk.f32.gmra.mxu1 %vm570_vm0, %v549_v43 }
 0x163   : > { %v636_v3 = vpop.f32.mrf.mxu1 }
 0x164   : > { %v637_v4 = vadd.f32 %v1422_v2, %v636_v3 }
 0x166   : > { %v684_v5 = vmax.f32 %v637_v4, 0.0 }
 0x168   : > { %732 = vmatmul.f32.vlgmr.msrb.gmra.mxu2 %v684_v5 }
 0x16b   : > { %v639_v6 = vpop.f32.mrf.mxu1 }
 0x16c   : > { %v640_v7 = vadd.f32 %v1422_v2, %v639_v6 }
 0x16e   : > { %v685_v8 = vmax.f32 %v640_v7, 0.0 }
 0x170   : > { %735 = vmatmul.f32.gmra.mxu2 %v685_v8 }
 0x173   : > { %v642_v9 = vpop.f32.mrf.mxu1 }
 0x174   : > { %v643_v10 = vadd.f32 %v1422_v2, %v642_v9 }
 0x176   : > { %v686_v11 = vmax.f32 %v643_v10, 0.0 }
 0x178   : > { %738 = vmatmul.f32.gmra.mxu2 %v686_v11 }
 0x17b   : > { %v645_v12 = vpop.f32.mrf.mxu1 }
 0x17c   : > { %v646_v13 = vadd.f32 %v1422_v2, %v645_v12 }
 0x17e   : > { %v687_v14 = vmax.f32 %v646_v13, 0.0 }
 0x180   : > { %741 = vmatmul.f32.gmra.mxu2 %v687_v14 }
 0x183   : > { %v648_v15 = vpop.f32.mrf.mxu1 }
 0x184   : > { %v649_v25 = vadd.f32 %v1422_v2, %v648_v15 }
 0x186   : > { %v688_v33 = vmax.f32 %v649_v25, 0.0 }
 0x187   : > { %v672_v52 = vpop.f32.mrf.mxu2 }
 0x188   : > { %744 = vmatmul.f32.gmra.mxu2 %v688_v33  ;;  %v673_v56 = vadd.f32 %v1422_v2, %v672_v52 }
 0x18a   : > { %v696_v58 = vmax.f32 %v673_v56, 0.0 }
 0x18b   : > { %v651_v34 = vpop.f32.mrf.mxu1 }
 0x18c   : > { %v652_v35 = vadd.f32 %v1422_v2, %v651_v34 }
 0x18e   : > { %v689_v36 = vmax.f32 %v652_v35, 0.0 }
 0x18f   : > { %v675_v57 = vpop.f32.mrf.mxu2 }
 0x190   : > { %747 = vmatmul.f32.gmra.mxu2 %v689_v36  ;;  %v676_v59 = vadd.f32 %v1422_v2, %v675_v57  ;;  %v1302_v36 = vld [vmem:[%s2152_s5 + $0xf0] sm:$0xff] }
 0x192   : > { %v697_v61 = vmax.f32 %v676_v59, 0.0 }
 0x193   : > { %v654_v37 = vpop.f32.mrf.mxu1 }
 0x194   : > { %v655_v38 = vadd.f32 %v1422_v2, %v654_v37  ;;  %v1301_v37 = vld [vmem:[%s2152_s5 + $0xe8] sm:$0xff] }
 0x196   : > { %v690_v39 = vmax.f32 %v655_v38, 0.0  ;;  %v1300_v38 = vld [vmem:[%s2152_s5 + $0xe0] sm:$0xff] }
 0x197   : > { %v678_v60 = vpop.f32.mrf.mxu2 }
 0x198   : > { %750 = vmatmul.f32.gmra.mxu2 %v690_v39  ;;  %v679_v62 = vadd.f32 %v1422_v2, %v678_v60  ;;  %v1299_v39 = vld [vmem:[%s2152_s5 + $0xd8] sm:$0xff] }
 0x19a   : > { %v698_v63 = vmax.f32 %v679_v62, 0.0 }
 0x19b   : > { %v657_v40 = vpop.f32.mrf.mxu1 }
 0x19c   : > { %v658_v41 = vadd.f32 %v1422_v2, %v657_v40  ;;  %v1298_v40 = vld [vmem:[%s2152_s5 + $0xd0] sm:$0xff] }
 0x19e   : > { %v691_v42 = vmax.f32 %v658_v41, 0.0  ;;  %v1297_v41 = vld [vmem:[%s2152_s5 + $0xc8] sm:$0xff] }
 0x19f   : > { %v681_v0 = vpop.f32.mrf.mxu2 }
 0x1a0   : > { %753 = vmatmul.f32.gmra.mxu2 %v691_v42  ;;  %v682_v1 = vadd.f32 %v1422_v2, %v681_v0  ;;  %v1296_v42 = vld [vmem:[%s2152_s5 + $0xc0] sm:$0xff] }
 0x1a2   : > { %v699_v3 = vmax.f32 %v682_v1, 0.0 }
 0x1a3   : > { %v660_v43 = vpop.f32.mrf.mxu1 }
 0x1a4   : > { %v661_v44 = vadd.f32 %v1422_v2, %v660_v43  ;;  %v1295_v43 = vld [vmem:[%s2152_s5 + $0xb8] sm:$0xff] }
 0x1a6   : > { %v692_v45 = vmax.f32 %v661_v44, 0.0  ;;  %v1294_v44 = vld [vmem:[%s2152_s5 + $0xb0] sm:$0xff] }
 0x1a8   : > { %756 = vmatmul.f32.gmra.mxu2 %v692_v45  ;;  %v1293_v45 = vld [vmem:[%s2152_s5 + $0xa8] sm:$0xff] }
 0x1ab   : > { %v663_v46 = vpop.f32.mrf.mxu1 }
 0x1ac   : > { %v664_v47 = vadd.f32 %v1422_v2, %v663_v46  ;;  %v1292_v46 = vld [vmem:[%s2152_s5 + $0xa0] sm:$0xff] }
 0x1ae   : > { %v693_v48 = vmax.f32 %v664_v47, 0.0  ;;  %v1291_v47 = vld [vmem:[%s2152_s5 + $0x98] sm:$0xff] }
 0x1b0   : > { %759 = vmatmul.f32.gmra.mxu2 %v693_v48  ;;  %v1290_v48 = vld [vmem:[%s2152_s5 + $0x90] sm:$0xff] }
 0x1b3   : > { %v666_v49 = vpop.f32.mrf.mxu1 }
 0x1b4   : > { %v667_v50 = vadd.f32 %v1422_v2, %v666_v49  ;;  %v1289_v49 = vld [vmem:[%s2152_s5 + $0x88] sm:$0xff] }
 0x1b6   : > { %v694_v51 = vmax.f32 %v667_v50, 0.0  ;;  %v1288_v50 = vld [vmem:[%s2152_s5 + $0x80] sm:$0xff] }
 0x1b8   : > { %762 = vmatmul.f32.gmra.mxu2 %v694_v51  ;;  %v1423_v51 = vld [vmem:[%s2153_s6] ss:$0 sm:$0xff] }
 0x1bb   : > { %v669_v53 = vpop.f32.mrf.mxu1 }
 0x1bc   : > { %v670_v54 = vadd.f32 %v1422_v2, %v669_v53  ;;  %v1303_v2 = vld [vmem:[%s2152_s5 + $0xf8] sm:$0xff] }
 0x1bd   : > { %883 = vmatpush.msrb.mxu1 %v1303_v2 }
 0x1be   : > { %v695_v55 = vmax.f32 %v670_v54, 0.0 }
 0x1bf   : > { %884 = vmatpush.msrb.mxu1 %v1302_v36 }
 0x1c0   : > { %765 = vmatmul.f32.gmra.mxu2 %v695_v55 }
 0x1c1   : > { %885 = vmatpush.msrb.mxu1 %v1301_v37 }
 0x1c3   : > { %886 = vmatpush.msrb.mxu1 %v1300_v38 }
 0x1c5   : > { %887 = vmatpush.msrb.mxu1 %v1299_v39 }
 0x1c7   : > { %888 = vmatpush.msrb.mxu1 %v1298_v40 }
 0x1c8   : > { %768 = vmatmul.f32.gmra.mxu2 %v696_v58 }
 0x1c9   : > { %889 = vmatpush.msrb.mxu1 %v1297_v41 }
 0x1cb   : > { %890 = vmatpush.msrb.mxu1 %v1296_v42 }
 0x1cd   : > { %891 = vmatpush.msrb.mxu1 %v1295_v43 }
 0x1cf   : > { %892 = vmatpush.msrb.mxu1 %v1294_v44 }
 0x1d0   : > { %771 = vmatmul.f32.gmra.mxu2 %v697_v61 }
 0x1d1   : > { %893 = vmatpush.msrb.mxu1 %v1293_v45 }
 0x1d3   : > { %894 = vmatpush.msrb.mxu1 %v1292_v46 }
 0x1d5   : > { %895 = vmatpush.msrb.mxu1 %v1291_v47 }
 0x1d7   : > { %896 = vmatpush.msrb.mxu1 %v1290_v48 }
 0x1d8   : > { %774 = vmatmul.f32.gmra.mxu2 %v698_v63 }
 0x1d9   : > { %897 = vmatpush.msrb.mxu1 %v1289_v49 }
 0x1db   : > { %898 = vmatpush.msrb.mxu1 %v1288_v50 }
 0x1e0   : > { %777 = vmatmul.f32.gmra.mxu2 %v699_v3 }
 0x1eb   : > { %v733_v4 = vpop.f32.mrf.mxu2 }
 0x1f3   : > { %v736_v5 = vpop.f32.mrf.mxu2 }
 0x1fb   : > { %v739_v6 = vpop.f32.mrf.mxu2 }
 0x203   : > { %v742_v7 = vpop.f32.mrf.mxu2 }
 0x20b   : > { %v745_v8 = vpop.f32.mrf.mxu2 }
 0x213   : > { %v748_v9 = vpop.f32.mrf.mxu2 }
 0x21b   : > { %v751_v10 = vpop.f32.mrf.mxu2 }
 0x223   : > { %v754_v11 = vpop.f32.mrf.mxu2 }
 0x22b   : > { %v757_v12 = vpop.f32.mrf.mxu2 }
 0x233   : > { %v760_v13 = vpop.f32.mrf.mxu2 }
 0x23b   : > { %v763_v14 = vpop.f32.mrf.mxu2 }
 0x243   : > { %v766_v15 = vpop.f32.mrf.mxu2 }
 0x24b   : > { %v769_v25 = vpop.f32.mrf.mxu2 }
 0x253   : > { %v772_v33 = vpop.f32.mrf.mxu2 }
 0x25b   : > { %v775_v34 = vpop.f32.mrf.mxu2 }
 0x263   : > { %v778_v35 = vpop.f32.mrf.mxu2 }
 0x264   : > { %785 = vmatpush.msrb.mxu3 %v778_v35 }
 0x266   : > { %786 = vmatpush.msrb.mxu3 %v775_v34 }
 0x268   : > { %787 = vmatpush.msrb.mxu3 %v772_v33 }
 0x26a   : > { %788 = vmatpush.msrb.mxu3 %v769_v25 }
 0x26c   : > { %789 = vmatpush.msrb.mxu3 %v766_v15 }
 0x26e   : > { %790 = vmatpush.msrb.mxu3 %v763_v14 }
 0x270   : > { %791 = vmatpush.msrb.mxu3 %v760_v13 }
 0x272   : > { %792 = vmatpush.msrb.mxu3 %v757_v12 }
 0x274   : > { %793 = vmatpush.msrb.mxu3 %v754_v11 }
 0x276   : > { %794 = vmatpush.msrb.mxu3 %v751_v10 }
 0x278   : > { %795 = vmatpush.msrb.mxu3 %v748_v9 }
 0x27a   : > { %796 = vmatpush.msrb.mxu3 %v745_v8 }
 0x27c   : > { %797 = vmatpush.msrb.mxu3 %v742_v7 }
 0x27e   : > { %798 = vmatpush.msrb.mxu3 %v739_v6 }
 0x280   : > { %799 = vmatpush.msrb.mxu3 %v736_v5 }
 0x282   : > { %800 = vmatpush.msrb.mxu3 %v733_v4 }
 0x283   : > { %801 = vmatmul.f32.vlgmr.msrb.gmra.mxu3 %v1844_v16 }
 0x28b   : > { %804 = vmatmul.f32.gmra.mxu3 %v1848_v17 }
 0x293   : > { %807 = vmatmul.f32.gmra.mxu3 %v1852_v18 }
 0x29b   : > { %810 = vmatmul.f32.gmra.mxu3 %v1856_v19 }
 0x2a3   : > { %813 = vmatmul.f32.gmra.mxu3 %v1864_v21 }
 0x2ab   : > { %816 = vmatmul.f32.gmra.mxu3 %v1872_v23 }
 0x2b3   : > { %819 = vmatmul.f32.gmra.mxu3 %v1883_v26 }
 0x2bb   : > { %822 = vmatmul.f32.gmra.mxu3 %v1891_v28 }
 0x2c3   : > { %825 = vmatmul.f32.gmra.mxu3 %v1899_v30 }
 0x2cb   : > { %828 = vmatmul.f32.gmra.mxu3 %v1860_v20 }
 0x2d3   : > { %831 = vmatmul.f32.gmra.mxu3 %v1868_v22 }
 0x2db   : > { %834 = vmatmul.f32.gmra.mxu3 %v1875_v24 }
 0x2e3   : > { %837 = vmatmul.f32.gmra.mxu3 %v1886_v27 }
 0x2eb   : > { %840 = vmatmul.f32.gmra.mxu3 %v1894_v29 }
 0x2f3   : > { %843 = vmatmul.f32.gmra.mxu3 %v1902_v31 }
 0x2fb   : > { %846 = vmatmul.f32.gmra.mxu3 %v1907_v32 }
 0x306   : > { %v802_v52 = vpop.f32.mrf.mxu3 }
 0x307   : > { %v803_v53 = vadd.f32 %v1423_v51, %v802_v52 }
 0x309   : > { %v850_v54 = vmax.f32 %v803_v53, 0.0 }
 0x30b   : > { %899 = vmatmul.f32.vlgmr.msrb.gmra.mxu1 %v850_v54 }
 0x30e   : > { %v805_v55 = vpop.f32.mrf.mxu3 }
 0x30f   : > { %v806_v56 = vadd.f32 %v1423_v51, %v805_v55 }
 0x311   : > { %v851_v57 = vmax.f32 %v806_v56, 0.0 }
 0x313   : > { %902 = vmatmul.f32.gmra.mxu1 %v851_v57 }
 0x316   : > { %v808_v58 = vpop.f32.mrf.mxu3 }
 0x317   : > { %v809_v59 = vadd.f32 %v1423_v51, %v808_v58 }
 0x319   : > { %v852_v60 = vmax.f32 %v809_v59, 0.0 }
 0x31b   : > { %905 = vmatmul.f32.gmra.mxu1 %v852_v60 }
 0x31e   : > { %v811_v61 = vpop.f32.mrf.mxu3 }
 0x31f   : > { %v812_v62 = vadd.f32 %v1423_v51, %v811_v61 }
 0x321   : > { %v853_v63 = vmax.f32 %v812_v62, 0.0 }
 0x323   : > { %908 = vmatmul.f32.gmra.mxu1 %v853_v63 }
 0x326   : > { %v814_v0 = vpop.f32.mrf.mxu3 }
 0x327   : > { %v815_v1 = vadd.f32 %v1423_v51, %v814_v0 }
 0x329   : > { %v854_v3 = vmax.f32 %v815_v1, 0.0 }
 0x32b   : > { %911 = vmatmul.f32.gmra.mxu1 %v854_v3 }
 0x32e   : > { %v817_v4 = vpop.f32.mrf.mxu3 }
 0x32f   : > { %v818_v5 = vadd.f32 %v1423_v51, %v817_v4 }
 0x331   : > { %v855_v6 = vmax.f32 %v818_v5, 0.0 }
 0x333   : > { %914 = vmatmul.f32.gmra.mxu1 %v855_v6 }
 0x336   : > { %v820_v7 = vpop.f32.mrf.mxu3 }
 0x337   : > { %v821_v8 = vadd.f32 %v1423_v51, %v820_v7 }
 0x339   : > { %v856_v9 = vmax.f32 %v821_v8, 0.0 }
 0x33b   : > { %917 = vmatmul.f32.gmra.mxu1 %v856_v9 }
 0x33e   : > { %v823_v10 = vpop.f32.mrf.mxu3 }
 0x33f   : > { %v824_v11 = vadd.f32 %v1423_v51, %v823_v10  ;;  %v1070_v10 = vld [vmem:[#allocation5 + $0x78] sm:$0xff] }
 0x340   : > { %1075 = vmatpush.msra.mxu3 %v1070_v10 }
 0x341   : > { %v857_v12 = vmax.f32 %v824_v11, 0.0  ;;  %v1069_v11 = vld [vmem:[#allocation5 + $0x70] sm:$0xff] }
 0x342   : > { %1076 = vmatpush.msra.mxu3 %v1069_v11 }
 0x343   : > { %920 = vmatmul.f32.gmra.mxu1 %v857_v12 }
 0x346   : > { %v826_v13 = vpop.f32.mrf.mxu3 }
 0x347   : > { %v827_v14 = vadd.f32 %v1423_v51, %v826_v13 }
 0x349   : > { %v858_v15 = vmax.f32 %v827_v14, 0.0  ;;  %v1068_v14 = vld [vmem:[#allocation5 + $0x68] sm:$0xff] }
 0x34a   : > { %1077 = vmatpush.msra.mxu3 %v1068_v14 }
 0x34b   : > { %923 = vmatmul.f32.gmra.mxu1 %v858_v15 }
 0x34e   : > { %v829_v25 = vpop.f32.mrf.mxu3 }
 0x34f   : > { %v830_v33 = vadd.f32 %v1423_v51, %v829_v25 }
 0x351   : > { %v859_v34 = vmax.f32 %v830_v33, 0.0  ;;  %v1067_v33 = vld [vmem:[#allocation5 + $0x60] sm:$0xff] }
 0x352   : > { %1078 = vmatpush.msra.mxu3 %v1067_v33 }
 0x353   : > { %926 = vmatmul.f32.gmra.mxu1 %v859_v34 }
 0x356   : > { %v832_v35 = vpop.f32.mrf.mxu3 }
 0x357   : > { %v833_v2 = vadd.f32 %v1423_v51, %v832_v35 }
 0x359   : > { %v860_v36 = vmax.f32 %v833_v2, 0.0  ;;  %v1066_v2 = vld [vmem:[#allocation5 + $0x58] sm:$0xff] }
 0x35a   : > { %1079 = vmatpush.msra.mxu3 %v1066_v2 }
 0x35b   : > { %929 = vmatmul.f32.gmra.mxu1 %v860_v36 }
 0x35e   : > { %v835_v37 = vpop.f32.mrf.mxu3 }
 0x35f   : > { %v836_v38 = vadd.f32 %v1423_v51, %v835_v37 }
 0x361   : > { %v861_v39 = vmax.f32 %v836_v38, 0.0  ;;  %v1065_v38 = vld [vmem:[#allocation5 + $0x50] sm:$0xff] }
 0x362   : > { %1080 = vmatpush.msra.mxu3 %v1065_v38 }
 0x363   : > { %932 = vmatmul.f32.gmra.mxu1 %v861_v39 }
 0x366   : > { %v838_v40 = vpop.f32.mrf.mxu3 }
 0x367   : > { %v839_v41 = vadd.f32 %v1423_v51, %v838_v40 }
 0x369   : > { %v862_v42 = vmax.f32 %v839_v41, 0.0  ;;  %v1064_v41 = vld [vmem:[#allocation5 + $0x48] sm:$0xff] }
 0x36a   : > { %1081 = vmatpush.msra.mxu3 %v1064_v41 }
 0x36b   : > { %935 = vmatmul.f32.gmra.mxu1 %v862_v42 }
 0x36e   : > { %v841_v43 = vpop.f32.mrf.mxu3 }
 0x36f   : > { %v842_v44 = vadd.f32 %v1423_v51, %v841_v43 }
 0x371   : > { %v863_v45 = vmax.f32 %v842_v44, 0.0  ;;  %v1063_v44 = vld [vmem:[#allocation5 + $0x40] sm:$0xff] }
 0x372   : > { %1082 = vmatpush.msra.mxu3 %v1063_v44 }
 0x373   : > { %938 = vmatmul.f32.gmra.mxu1 %v863_v45 }
 0x376   : > { %v844_v46 = vpop.f32.mrf.mxu3 }
 0x377   : > { %v845_v47 = vadd.f32 %v1423_v51, %v844_v46 }
 0x379   : > { %v864_v48 = vmax.f32 %v845_v47, 0.0  ;;  %v1062_v47 = vld [vmem:[#allocation5 + $0x38] sm:$0xff] }
 0x37a   : > { %1083 = vmatpush.msra.mxu3 %v1062_v47 }
 0x37b   : > { %941 = vmatmul.f32.gmra.mxu1 %v864_v48 }
 0x37e   : > { %v847_v49 = vpop.f32.mrf.mxu3 }
 0x37f   : > { %v848_v50 = vadd.f32 %v1423_v51, %v847_v49 }
 0x381   : > { %v865_v52 = vmax.f32 %v848_v50, 0.0  ;;  %v1061_v50 = vld [vmem:[#allocation5 + $0x30] sm:$0xff] }
 0x382   : > { %1084 = vmatpush.msra.mxu3 %v1061_v50 }
 0x383   : > { %944 = vmatmul.f32.gmra.mxu1 %v865_v52 }
 0x388   : > { %v900_v53 = vpop.f32.mrf.mxu1 }
 0x390   : > { %v903_v54 = vpop.f32.mrf.mxu1 }
 0x398   : > { %v906_v55 = vpop.f32.mrf.mxu1 }
 0x3a0   : > { %v909_v56 = vpop.f32.mrf.mxu1 }
 0x3a8   : > { %v912_v57 = vpop.f32.mrf.mxu1 }
 0x3b0   : > { %v915_v58 = vpop.f32.mrf.mxu1 }
 0x3b8   : > { %v918_v59 = vpop.f32.mrf.mxu1 }
 0x3c0   : > { %v921_v60 = vpop.f32.mrf.mxu1 }
 0x3c8   : > { %v924_v61 = vpop.f32.mrf.mxu1 }
 0x3d0   : > { %v927_v62 = vpop.f32.mrf.mxu1 }
 0x3d8   : > { %v930_v63 = vpop.f32.mrf.mxu1 }
 0x3e0   : > { %v933_v0 = vpop.f32.mrf.mxu1 }
 0x3e8   : > { %v936_v1 = vpop.f32.mrf.mxu1 }
 0x3f0   : > { %v939_v3 = vpop.f32.mrf.mxu1 }
 0x3f8   : > { %v942_v4 = vpop.f32.mrf.mxu1 }
 0x400   : > { %v945_v5 = vpop.f32.mrf.mxu1 }
 0x401   : > { %953 = vmatpush.msrb.mxu0 %v945_v5  ;;  %v1055_v5 = vld [vmem:[#allocation5] sm:$0xff] }
 0x403   : > { %954 = vmatpush.msrb.mxu0 %v942_v4 }
 0x405   : > { %955 = vmatpush.msrb.mxu0 %v939_v3  ;;  %v1056_v3 = vld [vmem:[#allocation5 + $0x8] sm:$0xff] }
 0x407   : > { %956 = vmatpush.msrb.mxu0 %v936_v1 }
 0x409   : > { %957 = vmatpush.msrb.mxu0 %v933_v0 }
 0x40b   : > { %958 = vmatpush.msrb.mxu0 %v930_v63  ;;  %v1057_v63 = vld [vmem:[#allocation5 + $0x10] sm:$0xff] }
 0x40d   : > { %959 = vmatpush.msrb.mxu0 %v927_v62 }
 0x40f   : > { %960 = vmatpush.msrb.mxu0 %v924_v61 }
 0x411   : > { %961 = vmatpush.msrb.mxu0 %v921_v60  ;;  %v1058_v60 = vld [vmem:[#allocation5 + $0x18] sm:$0xff] }
 0x413   : > { %962 = vmatpush.msrb.mxu0 %v918_v59 }
 0x415   : > { %963 = vmatpush.msrb.mxu0 %v915_v58 }
 0x417   : > { %964 = vmatpush.msrb.mxu0 %v912_v57  ;;  %v1059_v57 = vld [vmem:[#allocation5 + $0x20] sm:$0xff] }
 0x419   : > { %965 = vmatpush.msrb.mxu0 %v909_v56 }
 0x41b   : > { %966 = vmatpush.msrb.mxu0 %v906_v55 }
 0x41d   : > { %967 = vmatpush.msrb.mxu0 %v903_v54  ;;  %v1060_v54 = vld [vmem:[#allocation5 + $0x28] sm:$0xff] }
 0x41e   : > { %1085 = vmatpush.msra.mxu3 %v1060_v54 }
 0x41f   : > { %968 = vmatpush.msrb.mxu0 %v900_v53 }
 0x420   : > { %969 = vmatmul.f32.vlgmr.msrb.gmra.mxu0 %v1844_v16  ;;  %1086 = vmatpush.msra.mxu3 %v1059_v57 }
 0x422   : > { %1087 = vmatpush.msra.mxu3 %v1058_v60 }
 0x424   : > { %1088 = vmatpush.msra.mxu3 %v1057_v63 }
 0x426   : > { %1089 = vmatpush.msra.mxu3 %v1056_v3 }
 0x428   : > { %972 = vmatmul.f32.gmra.mxu0 %v1848_v17  ;;  %1090 = vmatpush.msra.mxu3 %v1055_v5 }
 0x430   : > { %975 = vmatmul.f32.gmra.mxu0 %v1852_v18 }
 0x438   : > { %978 = vmatmul.f32.gmra.mxu0 %v1856_v19 }
 0x440   : > { %981 = vmatmul.f32.gmra.mxu0 %v1864_v21 }
 0x448   : > { %984 = vmatmul.f32.gmra.mxu0 %v1872_v23 }
 0x450   : > { %987 = vmatmul.f32.gmra.mxu0 %v1883_v26 }
 0x458   : > { %990 = vmatmul.f32.gmra.mxu0 %v1891_v28 }
 0x460   : > { %993 = vmatmul.f32.gmra.mxu0 %v1899_v30 }
 0x468   : > { %996 = vmatmul.f32.gmra.mxu0 %v1860_v20 }
 0x470   : > { %999 = vmatmul.f32.gmra.mxu0 %v1868_v22 }
 0x478   : > { %1002 = vmatmul.f32.gmra.mxu0 %v1875_v24 }
 0x480   : > { %1005 = vmatmul.f32.gmra.mxu0 %v1886_v27 }
 0x488   : > { %1008 = vmatmul.f32.gmra.mxu0 %v1894_v29 }
 0x490   : > { %1011 = vmatmul.f32.gmra.mxu0 %v1902_v31 }
 0x498   : > { %1014 = vmatmul.f32.gmra.mxu0 %v1907_v32  ;;  %v2074_v32 = vld [vmem:[%s2153_s6 + $0x1] ss:$0 sm:$0xff] }
 0x49d   : > { %v2063_v16 = vpop.f32.mrf.mxu0 }
 0x49e   : > { %v971_v0 = vadd.f32 %v2074_v32, %v2063_v16  ;;  %v1110_v16 = vld [vmem:[#allocation7 + $0x70] sm:$0xff] }
 0x4a5   : > { %v2065_v17 = vpop.f32.mrf.mxu0 }
 0x4a6   : > { %v974_v61 = vadd.f32 %v2074_v32, %v2065_v17  ;;  %v1034_v17 = vld [vmem:[%s2149_s2] sm:$0xff] }
 0x4a8   : > { %v1019_v4 = vmax.f32 %v974_v61, 0.0 }
 0x4ad   : > { %v2067_v18 = vpop.f32.mrf.mxu0 }
 0x4ae   : > { %v977_v58 = vadd.f32 %v2074_v32, %v2067_v18  ;;  %v1018_v18 = vmax.f32 %v971_v0, 0.0 }
 0x4b0   : > { %v1020_v1 = vmax.f32 %v977_v58, 0.0 }
 0x4b5   : > { %v2069_v19 = vpop.f32.mrf.mxu0 }
 0x4b6   : > { %v980_v55 = vadd.f32 %v2074_v32, %v2069_v19  ;;  %v1111_v19 = vld [vmem:[#allocation7 + $0x78] sm:$0xff] }
 0x4b8   : > { %v1021_v62 = vmax.f32 %v980_v55, 0.0 }
 0x4bd   : > { %v982_v20 = vpop.f32.mrf.mxu0 }
 0x4be   : > { %v983_v52 = vadd.f32 %v2074_v32, %v982_v20  ;;  %v1109_v20 = vld [vmem:[#allocation7 + $0x68] sm:$0xff] }
 0x4c0   : > { %v1022_v59 = vmax.f32 %v983_v52, 0.0 }
 0x4c5   : > { %v985_v21 = vpop.f32.mrf.mxu0 }
 0x4c6   : > { %v986_v48 = vadd.f32 %v2074_v32, %v985_v21  ;;  %v1108_v21 = vld [vmem:[#allocation7 + $0x60] sm:$0xff] }
 0x4c8   : > { %v1023_v56 = vmax.f32 %v986_v48, 0.0 }
 0x4cd   : > { %v988_v22 = vpop.f32.mrf.mxu0 }
 0x4ce   : > { %v989_v45 = vadd.f32 %v2074_v32, %v988_v22  ;;  %v1107_v22 = vld [vmem:[#allocation7 + $0x58] sm:$0xff] }
 0x4d0   : > { %v1024_v53 = vmax.f32 %v989_v45, 0.0 }
 0x4d5   : > { %v991_v23 = vpop.f32.mrf.mxu0 }
 0x4d6   : > { %v992_v42 = vadd.f32 %v2074_v32, %v991_v23  ;;  %v1106_v23 = vld [vmem:[#allocation7 + $0x50] sm:$0xff] }
 0x4d8   : > { %v1025_v49 = vmax.f32 %v992_v42, 0.0 }
 0x4dd   : > { %v994_v24 = vpop.f32.mrf.mxu0 }
 0x4de   : > { %v995_v39 = vadd.f32 %v2074_v32, %v994_v24  ;;  %v1105_v24 = vld [vmem:[#allocation7 + $0x48] sm:$0xff] }
 0x4e0   : > { %v1026_v46 = vmax.f32 %v995_v39, 0.0 }
 0x4e5   : > { %v997_v26 = vpop.f32.mrf.mxu0 }
 0x4e6   : > { %v998_v36 = vadd.f32 %v2074_v32, %v997_v26  ;;  %v1104_v26 = vld [vmem:[#allocation7 + $0x40] sm:$0xff] }
 0x4e8   : > { %v1027_v43 = vmax.f32 %v998_v36, 0.0 }
 0x4ed   : > { %v1000_v27 = vpop.f32.mrf.mxu0 }
 0x4ee   : > { %v1001_v34 = vadd.f32 %v2074_v32, %v1000_v27  ;;  %v1103_v27 = vld [vmem:[#allocation7 + $0x38] sm:$0xff] }
 0x4f0   : > { %v1028_v40 = vmax.f32 %v1001_v34, 0.0 }
 0x4f5   : > { %v1003_v28 = vpop.f32.mrf.mxu0 }
 0x4f6   : > { %v1004_v15 = vadd.f32 %v2074_v32, %v1003_v28  ;;  %v1102_v28 = vld [vmem:[#allocation7 + $0x30] sm:$0xff] }
 0x4f8   : > { %v1029_v37 = vmax.f32 %v1004_v15, 0.0 }
 0x4fd   : > { %v1006_v29 = vpop.f32.mrf.mxu0 }
 0x4fe   : > { %v1007_v12 = vadd.f32 %v2074_v32, %v1006_v29  ;;  %v1101_v29 = vld [vmem:[#allocation7 + $0x28] sm:$0xff] }
 0x500   : > { %v1030_v35 = vmax.f32 %v1007_v12, 0.0  ;;  %v1426_v12 = vld [vmem:[%s2192_s28] ss:$0 sm:$0xff] }
 0x505   : > { %v1009_v30 = vpop.f32.mrf.mxu0 }
 0x506   : > { %v1010_v8 = vadd.f32 %v2074_v32, %v1009_v30  ;;  %v1100_v30 = vld [vmem:[#allocation7 + $0x20] sm:$0xff] }
 0x508   : > { %v1031_v25 = vmax.f32 %v1010_v8, 0.0  ;;  %v1425_v8 = vld [vmem:[%s2189_s17] ss:$0 sm:$0xff] }
 0x50d   : > { %v1012_v31 = vpop.f32.mrf.mxu0 }
 0x50e   : > { %v1013_v6 = vadd.f32 %v2074_v32, %v1012_v31  ;;  %v1099_v31 = vld [vmem:[#allocation7 + $0x18] sm:$0xff] }
 0x510   : > { %v1032_v13 = vmax.f32 %v1013_v6, 0.0  ;;  %v1097_v6 = vld [vmem:[#allocation7 + $0x8] sm:$0xff] }
 0x515   : > { %v1015_v51 = vpop.f32.mrf.mxu0 }
 0x516   : > { %v1016_v7 = vadd.f32 %v2074_v32, %v1015_v51  ;;  %v1098_v51 = vld [vmem:[#allocation7 + $0x10] sm:$0xff] }
 0x518   : > { %v1033_v9 = vmax.f32 %v1016_v7, 0.0  ;;  %v1096_v7 = vld [vmem:[#allocation7] sm:$0xff] }
 0x51a   : > { %1035 = vmatpush.msra.mxu2 %v1033_v9 }
 0x51c   : > { %1036 = vmatpush.msra.mxu2 %v1032_v13 }
 0x51e   : > { %1037 = vmatpush.msra.mxu2 %v1031_v25 }
 0x520   : > { %1038 = vmatpush.msra.mxu2 %v1030_v35 }
 0x522   : > { %1039 = vmatpush.msra.mxu2 %v1029_v37 }
 0x524   : > { %1040 = vmatpush.msra.mxu2 %v1028_v40 }
 0x526   : > { %1041 = vmatpush.msra.mxu2 %v1027_v43 }
 0x528   : > { %1042 = vmatpush.msra.mxu2 %v1026_v46 }
 0x52a   : > { %1043 = vmatpush.msra.mxu2 %v1025_v49 }
 0x52c   : > { %1044 = vmatpush.msra.mxu2 %v1024_v53 }
 0x52e   : > { %1045 = vmatpush.msra.mxu2 %v1023_v56 }
 0x530   : > { %1046 = vmatpush.msra.mxu2 %v1022_v59 }
 0x532   : > { %1047 = vmatpush.msra.mxu2 %v1021_v62 }
 0x534   : > { %1048 = vmatpush.msra.mxu2 %v1020_v1 }
 0x536   : > { %1049 = vmatpush.msra.mxu2 %v1019_v4 }
 0x538   : > { %1050 = vmatpush.msra.mxu2 %v1018_v18 }
 0x539   : > { %1051 = vmatmul.f32.vlgmr.msra.gmra.mxu2 %v1034_v17 }
 0x53a   : > { %1116 = vmatpush.msrb.mxu2 %v1111_v19 }
 0x53c   : > { %1117 = vmatpush.msrb.mxu2 %v1110_v16 }
 0x53e   : > { %1118 = vmatpush.msrb.mxu2 %v1109_v20 }
 0x540   : > { %1119 = vmatpush.msrb.mxu2 %v1108_v21 }
 0x542   : > { %1120 = vmatpush.msrb.mxu2 %v1107_v22 }
 0x544   : > { %1121 = vmatpush.msrb.mxu2 %v1106_v23 }
 0x546   : > { %1122 = vmatpush.msrb.mxu2 %v1105_v24 }
 0x548   : > { %1123 = vmatpush.msrb.mxu2 %v1104_v26 }
 0x54a   : > { %1124 = vmatpush.msrb.mxu2 %v1103_v27 }
 0x54c   : > { %1125 = vmatpush.msrb.mxu2 %v1102_v28 }
 0x54e   : > { %1126 = vmatpush.msrb.mxu2 %v1101_v29 }
 0x550   : > { %1127 = vmatpush.msrb.mxu2 %v1100_v30 }
 0x552   : > { %1128 = vmatpush.msrb.mxu2 %v1099_v31 }
 0x554   : > { %1129 = vmatpush.msrb.mxu2 %v1098_v51 }
 0x556   : > { %1130 = vmatpush.msrb.mxu2 %v1097_v6 }
 0x558   : > { %1131 = vmatpush.msrb.mxu2 %v1096_v7 }
 0x5bc   : > { %v1052_v32 = vpop.f32.mrf.mxu2 }
 0x5bd   : > { %1091 = vmatmul.f32.vlgmr.msra.gmra.mxu3 %v1052_v32 }
 0x640   : > { %v1092_v9 = vpop.f32.mrf.mxu3 }
 0x641   : > { %v1093_v10 = vadd.f32 %v1425_v8, %v1092_v9 }
 0x643   : > { %v1095_v11 = vmax.f32 %v1093_v10, 0.0 }
 0x645   : > { %1132 = vmatmul.f32.vlgmr.msrb.gmra.mxu2 %v1095_v11 }
 0x6c8   : > { %v1133_v13 = vpop.f32.mrf.mxu2 }
 0x6c9   : > { %v1134_v14 = vadd.f32 %v1426_v12, %v1133_v13 }
 0x6cb   : > { %1136 = vst [vmem:[%s459_s20] sm:$0xff] %v1134_v14 }
 0x6cc   : > { %1544 = shalt.err (!%p1541_p4)
}
 0x6cd   : > { %1338 = dma.vmem_to_hbm [thread:$0]  (%p1729_p7), %s1151_s13, 128, %s1153_s15, %s1138_s9  }
 0x6ce PF: > { %s2193_s26 = sld [smem:[#allocation12_spill]]  ;;  %p2195_p5 = scmp.ge.s32.totalorder %s1611_s23, 2 }
 0x6d0   : > { %p1352_p6 = pnand %p2195_p5, %p1734_p9 }
 0x6d2   : > { %p1353_p8 = pneg %p1352_p6 }
 0x6d4   : > { %s1164_s12 = sand.u32 1, %s2193_s26  }
 0x6d5   : > { %s1165_s11 = scalar_lea.sflag [#allocation4], %s1164_s12 }
 0x6d6   : > { %1582 = dma.done.wait (%p1353_p8), %s1165_s11, 128  }
 0x6d7   : > { %1584 = vsyncadd (%p1353_p8), %s1165_s11, 4294967168  ;;  %s2196_s23 = sld [smem:[#allocation15_spill]]  ;;  %s2198_s17 = smov %s1591_s18 }
 0x6d8   : > { %s2197_s27 = sld [smem:[#allocation16_spill]]  ;;  %s2199_s18 = smov %s1595_s19 }
 0x6d9   : > { %s2200_s19 = smov %s1780_s30  ;;  %s2201_s20 = smov %s1603_s21 }
 0x6da   : > { %s2202_s21 = smov %s1607_s22 }
 0x6dd   : > { %p25_p7 = scmp.ge.s32.totalorder %s2196_s23, 4  }
 0x6de   : > { %s2203_s22 = smov %s2197_s27 }
 0x6df   :  { %27 = sbr.rel (!%p25_p7) target bundleno = 14 (0xe), region = 122 }
 0x6e4   :  { %1171 = vsyncpa [#allocation3], 1 }
 0x6e5   :  { %1173 = vsyncpa [#allocation3 + $0x1], 1 }
 0x6e6   :  { %1174 = vsyncpa [#allocation6], 1 }
 0x6e7   :  { %1175 = vsyncpa [#allocation4], 1 }
 0x6e8   :  { %1177 = vsyncpa [#allocation4 + $0x1], 1 }

</bundles_post_ra>
